<compile_context>
chip_gen: v7x
topology: tpu7x:2x2x1
jax: 0.10.0
libtpu: 0.0.40
codegen_flags: <defaults>
</compile_context>

<pallas_src>
import functools

import jax
import jax.numpy as jnp
from jax.experimental import pallas as pl
from jax.experimental.pallas import tpu as pltpu

GAMMA = 1.5          # handled exactly as m * sqrt(m)
ALPHA = 0.25
LANES = 128


def _tpu_kind():
    try:
        return (jax.devices()[0].device_kind or "").lower()
    except Exception:
        return ""


def _tile_config():
    """(max_row_tile, has_two_tensorcores) per TPU generation."""
    kind = _tpu_kind()
    if "v7" in kind:
        return 4096, True       # 3.2 TB/s HBM -> amortize step overhead; 2 TCs
    if "v6" in kind:
        return 2048, False      # already near HBM roofline at 1024-2048
    return 1024, False          # v5e / unknown: firmly DMA-bound, modest tiles


def _focal_loss_kernel(pred_ref, true_ref, out_ref, acc_ref, *,
                       tiles_per_shard, row_tile, rem_elems, need_mask,
                       has_shard_axis):
    if has_shard_axis:
        s = pl.program_id(0)          # CORE_PARALLEL shard axis (v7x)
        i = pl.program_id(1)          # reduction axis ("arbitrary")
    else:
        i = pl.program_id(0)

    last_i = i == tiles_per_shard - 1
    if has_shard_axis:
        is_tail_block = jnp.logical_and(last_i, s == pl.num_programs(0) - 1)
    else:
        is_tail_block = last_i

    # Zero the resident per-shard accumulator at the start of each shard.
    @pl.when(i == 0)
    def _():
        acc_ref[...] = jnp.zeros_like(acc_ref)

    x = pred_ref[...].astype(jnp.float32)   # logits
    z = true_ref[...].astype(jnp.float32)   # targets

    # exp(-|x|) computed once, shared by the BCE log term and the sigmoid.
    e = jnp.exp(-jnp.abs(x))

    # BCEWithLogitsLoss (reduction='none'): max(x,0) - x*z + log1p(exp(-|x|))
    bce = jnp.maximum(x, 0.0) - x * z + jnp.log1p(e)

    # Numerically-stable sigmoid from e; approx vrcp (EUP) — error ~2^-12 is
    # irrelevant after the mean.
    denom_inv = pl.reciprocal(1.0 + e, approx=True)
    p = jnp.where(x >= 0.0, denom_inv, e * denom_inv)

    p_t = z * p + (1.0 - z) * (1.0 - p)
    alpha_factor = z * ALPHA + (1.0 - z) * (1.0 - ALPHA)
    m = 1.0 - p_t
    loss = bce * alpha_factor * (m * jnp.sqrt(m))   # == m ** GAMMA (GAMMA=1.5)

    if need_mask:
        # Only the tail block can contain padded / out-of-bounds elements.
        # Mask with select (NOT multiply: OOB rows may hold NaN/Inf garbage);
        # all other steps do a pure VPU add (no iota/compare/select).
        @pl.when(is_tail_block)
        def _():
            row_ids = jax.lax.broadcasted_iota(jnp.int32, (row_tile, LANES), 0)
            lane_ids = jax.lax.broadcasted_iota(jnp.int32, (row_tile, LANES), 1)
            local_idx = row_ids * LANES + lane_ids   # block-local: no i32 overflow
            acc_ref[...] += jnp.where(local_idx < rem_elems, loss, 0.0)

        @pl.when(jnp.logical_not(is_tail_block))
        def _():
            acc_ref[...] += loss
    else:
        acc_ref[...] += loss

    # Epilogue (once per shard): fold (row_tile,128) -> (8,128) so the HBM
    # writeback and the follow-up XLA reduction are tiny.
    @pl.when(last_i)
    def _():
        out_ref[...] = acc_ref[...].reshape(row_tile // 8, 8, LANES).sum(axis=0)


def _launch(pred2d, true2d, *, total, rows, row_tile, n_tiles, num_shards):
    rem_elems = total - (n_tiles - 1) * row_tile * LANES
    need_mask = rem_elems != row_tile * LANES
    tiles_per_shard = n_tiles // num_shards
    has_shard_axis = num_shards > 1

    kernel = functools.partial(
        _focal_loss_kernel,
        tiles_per_shard=tiles_per_shard,
        row_tile=row_tile,
        rem_elems=rem_elems,
        need_mask=need_mask,
        has_shard_axis=has_shard_axis,
    )

    if has_shard_axis:
        grid = (num_shards, tiles_per_shard)
        in_spec = pl.BlockSpec((row_tile, LANES),
                               lambda s, i: (s * tiles_per_shard + i, 0))
        out_spec = pl.BlockSpec((None, 8, LANES), lambda s, i: (s, 0, 0))
        out_shape = jax.ShapeDtypeStruct((num_shards, 8, LANES), jnp.float32)
        dim_sem = (pltpu.CORE_PARALLEL, pltpu.ARBITRARY)  # real 2-TC split (v7x)
    else:
        grid = (n_tiles,)
        in_spec = pl.BlockSpec((row_tile, LANES), lambda i: (i, 0))
        out_spec = pl.BlockSpec((8, LANES), lambda i: (0, 0))
        out_shape = jax.ShapeDtypeStruct((8, LANES), jnp.float32)
        dim_sem = ("arbitrary",)

    itemsize = jnp.dtype(pred2d.dtype).itemsize
    cost = pl.CostEstimate(
        flops=18 * total,
        transcendentals=4 * total,          # exp, log1p, rcp, sqrt
        bytes_accessed=2 * rows * LANES * itemsize + num_shards * 8 * LANES * 4,
    )

    return pl.pallas_call(
        kernel,
        out_shape=out_shape,
        grid_spec=pltpu.PrefetchScalarGridSpec(
            num_scalar_prefetch=0,
            grid=grid,
            in_specs=[in_spec, in_spec],
            out_specs=out_spec,
            scratch_shapes=[pltpu.VMEM((row_tile, LANES), jnp.float32)],
        ),
        compiler_params=pltpu.CompilerParams(
            dimension_semantics=dim_sem,
            vmem_limit_bytes=32 * 1024 * 1024,   # ample on v5e/v6e/v7x
        ),
        cost_estimate=cost,
    )(pred2d, true2d)


def focal_loss(pred, true):
    """Focal loss (BCE-with-logits base, mean reduction) for same-shape pred/true."""
    assert pred.shape == true.shape
    total = pred.size
    assert total > 0

    max_row_tile, two_cores = _tile_config()

    # Lane-dense [rows, 128] view.  When the collapsed trailing-dim product is
    # a multiple of 128 (typical conv feature maps, incl. [B,C,16,16]) this
    # reshape is layout-compatible and free; otherwise XLA may emit one
    # relayout pass — documented, and only in the non-divisible case.
    pred_flat = pred.reshape(-1)
    true_flat = true.reshape(-1)
    if total % LANES != 0:
        # Pad only to the next lane row (< 128 elems); masked in the kernel.
        pad = LANES - total % LANES
        pred_flat = jnp.pad(pred_flat, (0, pad))
        true_flat = jnp.pad(true_flat, (0, pad))
    rows = pred_flat.size // LANES

    # Row tile: multiple of 8, as large as the per-generation budget allows;
    # the last block may be partial (grid uses cdiv, tail is masked in-kernel).
    row_tile = min(max_row_tile, ((rows + 7) // 8) * 8)
    n_tiles = -(-rows // row_tile)

    pred2d = pred_flat.reshape(rows, LANES)
    true2d = true_flat.reshape(rows, LANES)

    # Split across the two TensorCores only where a second TC exists.
    num_shards = 2 if (two_cores and n_tiles >= 2 and n_tiles % 2 == 0) else 1

    kwargs = dict(total=total, rows=rows, row_tile=row_tile, n_tiles=n_tiles)
    if num_shards == 2:
        try:
            partials = _launch(pred2d, true2d, num_shards=2, **kwargs)
        except Exception:   # conservative fallback if CORE_PARALLEL is rejected
            partials = _launch(pred2d, true2d, num_shards=1, **kwargs)
    else:
        partials = _launch(pred2d, true2d, num_shards=1, **kwargs)

    # Tiny final (<= 2x8x128) reduce + mean done by XLA.
    return jnp.sum(partials) / jnp.float32(total)


def focal_loss_ref(pred, true):
    """Pure-JAX reference mirroring the PyTorch module math (exact sigmoid)."""
    x = pred.astype(jnp.float32)
    z = true.astype(jnp.float32)
    bce = jnp.maximum(x, 0.0) - x * z + jnp.log1p(jnp.exp(-jnp.abs(x)))
    p = jax.nn.sigmoid(x)
    p_t = z * p + (1.0 - z) * (1.0 - p)
    alpha_factor = z * ALPHA + (1.0 - z) * (1.0 - ALPHA)
    loss = bce * alpha_factor * (1.0 - p_t) ** GAMMA
    return jnp.mean(loss)


if __name__ == "__main__":
    key = jax.random.PRNGKey(0)
    k1, k2 = jax.random.split(key)
    # pred: logits, true: binary targets, shape [B=2, C=4, H=16, W=16]
    pred = jax.random.normal(k1, (2, 4, 16, 16), dtype=jnp.float32)
    true = jax.random.bernoulli(k2, 0.3, (2, 4, 16, 16)).astype(jnp.float32)

    out = focal_loss(pred, true)
    jax.block_until_ready(out)

    ref = focal_loss_ref(pred, true)
    # Slightly looser rtol because the kernel uses the EUP approx reciprocal
    # (per perf review); exact math otherwise matches the PyTorch module.
    assert jnp.allclose(out, ref, rtol=2e-3, atol=1e-6), (out, ref)
    print("KERNEL_OK")
</pallas_src>

<mosaic_0001>
module attributes {stable_mosaic.version = 11 : i64} {
  func.func @_focal_loss_kernel(%arg0: i32, %arg1: memref<16x128xf32, #tpu.memory_space<vmem>>, %arg2: memref<16x128xf32, #tpu.memory_space<vmem>>, %arg3: memref<8x128xf32, #tpu.memory_space<vmem>>, %arg4: memref<16x128xf32, #tpu.memory_space<vmem>>) attributes {dimension_semantics = [#tpu.dimension_semantics<arbitrary>], iteration_bounds = array<i64: 1>, scalar_prefetch = 0 : i64, scratch_operands = 1 : i64, tpu.core_type = #tpu.core_type<tc>, window_params = [{transform_indices = @transform_0, window_bounds = array<i64: 16, 128>}, {transform_indices = @transform_1, window_bounds = array<i64: 16, 128>}, {pipeline_mode = #tpu.pipeline_mode<synchronous>, transform_indices = @transform_2, window_bounds = array<i64: 8, 128>}]} {
    %c0_i32 = arith.constant 0 : i32
    %0 = arith.cmpi eq, %arg0, %c0_i32 : i32
    %c0_i32_0 = arith.constant 0 : i32
    %1 = arith.cmpi eq, %arg0, %c0_i32_0 : i32
    %2 = arith.extui %1 : i1 to i32
    %c0_i32_1 = arith.constant 0 : i32
    %3 = arith.cmpi ne, %2, %c0_i32_1 : i32
    scf.if %3 {
      %cst_19 = arith.constant 0.000000e+00 : f32
      %48 = vector.broadcast %cst_19 : f32 to vector<16x128xf32>
      %c0_20 = arith.constant 0 : index
      %c0_21 = arith.constant 0 : index
      %49 = vector.load %arg4[%c0_20, %c0_21] : memref<16x128xf32, #tpu.memory_space<vmem>>, vector<16x128xf32>
      tpu.vector_store %arg4[%c0_20, %c0_21], %48 {strides = array<i32>} : memref<16x128xf32, #tpu.memory_space<vmem>>, vector<16x128xf32>,
    } else {
    }
    %c0 = arith.constant 0 : index
    %c0_2 = arith.constant 0 : index
    %4 = vector.load %arg1[%c0, %c0_2] : memref<16x128xf32, #tpu.memory_space<vmem>>, vector<16x128xf32>
    %c0_3 = arith.constant 0 : index
    %c0_4 = arith.constant 0 : index
    %5 = vector.load %arg2[%c0_3, %c0_4] : memref<16x128xf32, #tpu.memory_space<vmem>>, vector<16x128xf32>
    %6 = math.absf %4 : vector<16x128xf32>
    %cst = arith.constant 0.000000e+00 : f32
    %7 = vector.broadcast %cst : f32 to vector<16x128xf32>
    %8 = arith.subf %7, %6 : vector<16x128xf32>
    %9 = math.exp %8 : vector<16x128xf32>
    %cst_5 = arith.constant 0.000000e+00 : f32
    %10 = vector.broadcast %cst_5 : f32 to vector<16x128xf32>
    %11 = arith.maximumf %4, %10 : vector<16x128xf32>
    %12 = arith.mulf %4, %5 : vector<16x128xf32>
    %13 = arith.subf %11, %12 : vector<16x128xf32>
    %14 = math.log1p %9 : vector<16x128xf32>
    %15 = arith.addf %13, %14 : vector<16x128xf32>
    %cst_6 = arith.constant 1.000000e+00 : f32
    %16 = vector.broadcast %cst_6 : f32 to vector<16x128xf32>
    %17 = arith.addf %16, %9 : vector<16x128xf32>
    %18 = tpu.reciprocal %17 {approx = true} : vector<16x128xf32> -> vector<16x128xf32>
    %cst_7 = arith.constant 0.000000e+00 : f32
    %19 = vector.broadcast %cst_7 : f32 to vector<16x128xf32>
    %20 = arith.cmpf oge, %4, %19 : vector<16x128xf32>
    %21 = arith.mulf %9, %18 : vector<16x128xf32>
    %22 = arith.select %20, %18, %21 : vector<16x128xi1>, vector<16x128xf32>
    %23 = arith.mulf %5, %22 : vector<16x128xf32>
    %cst_8 = arith.constant 1.000000e+00 : f32
    %24 = vector.broadcast %cst_8 : f32 to vector<16x128xf32>
    %25 = arith.subf %24, %5 : vector<16x128xf32>
    %cst_9 = arith.constant 1.000000e+00 : f32
    %26 = vector.broadcast %cst_9 : f32 to vector<16x128xf32>
    %27 = arith.subf %26, %22 : vector<16x128xf32>
    %28 = arith.mulf %25, %27 : vector<16x128xf32>
    %29 = arith.addf %23, %28 : vector<16x128xf32>
    %cst_10 = arith.constant 2.500000e-01 : f32
    %30 = vector.broadcast %cst_10 : f32 to vector<16x128xf32>
    %31 = arith.mulf %5, %30 : vector<16x128xf32>
    %cst_11 = arith.constant 1.000000e+00 : f32
    %32 = vector.broadcast %cst_11 : f32 to vector<16x128xf32>
    %33 = arith.subf %32, %5 : vector<16x128xf32>
    %cst_12 = arith.constant 7.500000e-01 : f32
    %34 = vector.broadcast %cst_12 : f32 to vector<16x128xf32>
    %35 = arith.mulf %33, %34 : vector<16x128xf32>
    %36 = arith.addf %31, %35 : vector<16x128xf32>
    %cst_13 = arith.constant 1.000000e+00 : f32
    %37 = vector.broadcast %cst_13 : f32 to vector<16x128xf32>
    %38 = arith.subf %37, %29 : vector<16x128xf32>
    %39 = arith.mulf %15, %36 : vector<16x128xf32>
    %40 = math.sqrt %38 : vector<16x128xf32>
    %41 = arith.mulf %38, %40 : vector<16x128xf32>
    %42 = arith.mulf %39, %41 : vector<16x128xf32>
    %c0_14 = arith.constant 0 : index
    %c0_15 = arith.constant 0 : index
    %43 = vector.load %arg4[%c0_14, %c0_15] : memref<16x128xf32, #tpu.memory_space<vmem>>, vector<16x128xf32>
    %44 = arith.addf %43, %42 : vector<16x128xf32>
    %c0_16 = arith.constant 0 : index
    %c0_17 = arith.constant 0 : index
    %45 = vector.load %arg4[%c0_16, %c0_17] : memref<16x128xf32, #tpu.memory_space<vmem>>, vector<16x128xf32>
    tpu.vector_store %arg4[%c0_16, %c0_17], %44 {strides = array<i32>} : memref<16x128xf32, #tpu.memory_space<vmem>>, vector<16x128xf32>,
    %46 = arith.extui %0 : i1 to i32
    %c0_i32_18 = arith.constant 0 : i32
    %47 = arith.cmpi ne, %46, %c0_i32_18 : i32
    scf.if %47 {
      %c0_19 = arith.constant 0 : index
      %c0_20 = arith.constant 0 : index
      %48 = vector.load %arg4[%c0_19, %c0_20] : memref<16x128xf32, #tpu.memory_space<vmem>>, vector<16x128xf32>
      %49 = vector.shape_cast %48 : vector<16x128xf32> to vector<2x8x128xf32>
      %cst_21 = arith.constant dense<0.000000e+00> : vector<8x128xf32>
      %50 = vector.multi_reduction <add>, %49, %cst_21 [0] : vector<2x8x128xf32> to vector<8x128xf32>
      %c0_22 = arith.constant 0 : index
      %c0_23 = arith.constant 0 : index
      %51 = vector.load %arg3[%c0_22, %c0_23] : memref<8x128xf32, #tpu.memory_space<vmem>>, vector<8x128xf32>
      tpu.vector_store %arg3[%c0_22, %c0_23], %50 {strides = array<i32>} : memref<8x128xf32, #tpu.memory_space<vmem>>, vector<8x128xf32>,
    } else {
    }
    return
  }
  func.func @transform_0(%arg0: i32) -> (i32, i32) {
    %c0_i32 = arith.constant 0 : i32
    %c0_i32_0 = arith.constant 0 : i32
    return %arg0, %c0_i32 : i32, i32
  }
  func.func @transform_1(%arg0: i32) -> (i32, i32) {
    %c0_i32 = arith.constant 0 : i32
    %c0_i32_0 = arith.constant 0 : i32
    return %arg0, %c0_i32 : i32, i32
  }
  func.func @transform_2(%arg0: i32) -> (i32, i32) {
    %c0_i32 = arith.constant 0 : i32
    %c0_i32_0 = arith.constant 0 : i32
    %c0_i32_1 = arith.constant 0 : i32
    return %c0_i32, %c0_i32_0 : i32, i32
  }
}

</mosaic_0001>

<bundles_post_ra>
// kernel: tpu_custom_call.1
= control target key start
LH: loop header
LB: loop body
LE: loop exit
PB: predicated region body
PF: predicated region fallthrough
CT: control target
= control target key end

     0   :  { %7 = vsyncpa [#allocation4], 0  ;;  %s316_s0 = inlined_call_operand.hbm [shape: f32[16,128], index: 0, kind: input, shape index: {}]   ;;  %s317_s1 = inlined_call_operand.hbm [shape: f32[16,128], index: 1, kind: input, shape index: {}]   ;;  %s318_s2 = inlined_call_operand.hbm [shape: f32[8,128], index: 2, kind: output, shape index: {}]  }
   0x1   :  { %8 = vsyncpa [#allocation7], 0 }
   0x2   :  { %9 = vsyncpa [#allocation5], 0  ;;  %s254_s9 = smov [#allocation3]   ;;  %s182_s13 = scalar_lea.hbm %s316_s0, 256 }
   0x3   :  { %s15_s10 = sshll.u32 %s254_s9, 4  ;;  %p183_p0 = scmp.ne.s32.totalorder %s316_s0, %s182_s13  ;;  %s16_s10 = int_to_ptr.vmem [resolvable:$true] %s15_s10 }
   0x4   :  { %p186_p1 = scmp.lt.u32.totalorder %s182_s13, %s316_s0 }
   0x6   :  { %p188_p2 = pnand %p186_p1, %p183_p0 }
   0x8   :  { %191 = shalt.err (!%p188_p2)
}
   0x9   :  { %s192_s18 = scalar_lea.vmem %s16_s10, 256  ;;  %p197_p4 = scmp.lt.s32.totalorder %s16_s10, %s16_s10 }
   0xa   :  { %p193_p3 = scmp.ne.s32.totalorder %s16_s10, %s192_s18  ;;  %p198_p5 = scmp.lt.s32.totalorder %s192_s18, %s192_s18 }
   0xc   :  { %p199_p6 = por %p198_p5, %p197_p4 }
   0xe   :  { %p200_p7 = pnand %p199_p6, %p193_p3 }
  0x10   :  { %203 = shalt.err (!%p200_p7)
}
  0x11   :  { %s255_s19 = smov 128   ;;  %s256_s20 = smov 8  }
  0x12   :  { %21 = dma.hbm_to_vmem [thread:$0]  %s316_s0, 256, %s16_s10, [#allocation4], %s255_s19, %s255_s19, %s256_s20  }
  0x13   :  { %s257_s23 = smov [#allocation6]   ;;  %s204_s27 = scalar_lea.hbm %s317_s1, 256 }
  0x14   :  { %s27_s24 = sshll.u32 %s257_s23, 4  ;;  %p205_p8 = scmp.ne.s32.totalorder %s317_s1, %s204_s27  ;;  %s28_s24 = int_to_ptr.vmem [resolvable:$true] %s27_s24 }
  0x15   :  { %p208_p9 = scmp.lt.u32.totalorder %s204_s27, %s317_s1 }
  0x17   :  { %p210_p10 = pnand %p208_p9, %p205_p8 }
  0x19   :  { %213 = shalt.err (!%p210_p10)
}
  0x1a   :  { %s214_s4 = scalar_lea.vmem %s28_s24, 256  ;;  %p219_p12 = scmp.lt.s32.totalorder %s28_s24, %s28_s24 }
  0x1b   :  { %p215_p11 = scmp.ne.s32.totalorder %s28_s24, %s214_s4  ;;  %p220_p13 = scmp.lt.s32.totalorder %s214_s4, %s214_s4 }
  0x1d   :  { %p221_p0 = por %p220_p13, %p219_p12 }
  0x1f   :  { %p222_p1 = pnand %p221_p0, %p215_p11 }
  0x21   :  { %225 = shalt.err (!%p222_p1)
}
  0x22   :  { %33 = dma.hbm_to_vmem [thread:$0]  %s317_s1, 256, %s28_s24, [#allocation7], %s255_s19, %s255_s19, %s256_s20  }
  0x23   :  { %248 = dma.done.wait [#allocation4], 256  }
  0x24   :  { %249 = vsyncadd [#allocation4], 4294967040 }
  0x25   :  { %250 = dma.done.wait [#allocation7], 256  }
  0x26   :  { %251 = vsyncadd [#allocation7], 4294967040  ;;  %v46_v0 = vld [vmem:[#allocation3] sm:$0xff]  ;;  %v298_v1 = vld [vmem:[#allocation3 + $0x8] sm:$0xff]  ;;  %s258_s1 = smov [#allocation8]  }
  0x27   :  { %v50_v2 = vand.u32 2147483647, %v46_v0  ;;  %v51_v3 = vand.u32 2147483647, %v298_v1  ;;  %v48_v12 = vld [vmem:[#allocation6] sm:$0xff]  ;;  %v49_v14 = vld [vmem:[#allocation6 + $0x8] sm:$0xff] }
  0x28   :  { %vm88_vm0 = vcmp.ge.f32.partialorder %v46_v0, 0.0  ;;  %vm89_vm1 = vcmp.ge.f32.partialorder %v298_v1, 0.0  ;;  %v96_v18 = vsub.f32 1.0, %v48_v12  ;;  %v97_v20 = vsub.f32 1.0, %v49_v14  ;;  %s151_s6 = sshll.u32 %s258_s1, 4  ;;  %s152_s6 = int_to_ptr.vmem [resolvable:$true] %s151_s6 }
  0x29   :  { %v52_v4 = vsub.f32 0.0, %v50_v2  ;;  %v53_v5 = vsub.f32 0.0, %v51_v3  ;;  %v58_v40 = vmax.f32 %v46_v0, 0.0  ;;  %v60_v41 = vmul.f32 %v48_v12, %v46_v0  ;;  %s226_s7 = scalar_lea.vmem %s152_s6, 128  ;;  %p231_p3 = scmp.lt.s32.totalorder %s152_s6, %s152_s6 }
  0x2a   :  { %v59_v42 = vmax.f32 %v298_v1, 0.0  ;;  %v61_v43 = vmul.f32 %v49_v14, %v298_v1  ;;  %v104_v49 = vmul.f32 0.25, %v48_v12  ;;  %v106_v50 = vmul.f32 0.75, %v96_v18  ;;  %p227_p2 = scmp.ne.s32.totalorder %s152_s6, %s226_s7  ;;  %p232_p4 = scmp.lt.s32.totalorder %s226_s7, %s226_s7 }
  0x2b   :  { %v54_v6 = vmul.f32 1.442695, %v52_v4  ;;  %v56_v7 = vmul.f32 1.442695, %v53_v5  ;;  %v62_v48 = vsub.f32 %v58_v40, %v60_v41  ;;  %v105_v53 = vmul.f32 0.25, %v49_v14 }
  0x2c   :  { %v63_v51 = vsub.f32 %v59_v42, %v61_v43  ;;  %v107_v54 = vmul.f32 0.75, %v97_v20  ;;  %v108_v57 = vadd.f32 %v106_v50, %v104_v49  ;;  %p233_p5 = por %p232_p4, %p231_p3 }
  0x2d   :  { %166 = vpow2.f32 %v54_v6 }
  0x2e   :  { %168 = vpow2.f32 %v56_v7  ;;  %v109_v60 = vadd.f32 %v107_v54, %v105_v53  ;;  %p234_p6 = pnand %p233_p5, %p227_p2 }
  0x37   :  { %v167_v8 = vpop.eup %166 }
  0x38   :  { %v169_v9 = vpop.eup %168  ;;  %v64_v10 = vadd.f32 1.0, %v167_v8  ;;  %v67_v26 = vmul.f32 -0.5, %v167_v8  ;;  %v70_v35 = vand.u32 2147483647, %v167_v8 }
  0x39   :  { %v73_v11 = vadd.f32 1.0, %v169_v9  ;;  %v76_v28 = vmul.f32 -0.5, %v169_v9  ;;  %v79_v39 = vand.u32 2147483647, %v169_v9 }
  0x3a   :  { %170 = vrcp.f32 %v64_v10  ;;  %v68_v32 = vadd.f32 1.0, %v67_v26  ;;  %vm71_vm2 = vcmp.lt.f32.partialorder %v70_v35, 0.0004427343 }
  0x3b   :  { %172 = vrcp.f32 %v73_v11  ;;  %v77_v36 = vadd.f32 1.0, %v76_v28  ;;  %vm80_vm3 = vcmp.lt.f32.partialorder %v79_v39, 0.0004427343 }
  0x3c   :  { %174 = vlog2.f32 %v64_v10  ;;  %v69_v45 = vmul.f32 %v167_v8, %v68_v32 }
  0x3d   :  { %176 = vlog2.f32 %v73_v11  ;;  %v78_v47 = vmul.f32 %v169_v9, %v77_v36 }
  0x44   :  { %v171_v13 = vpop.eup %170 }
  0x45   :  { %v173_v15 = vpop.eup %172  ;;  %v90_v16 = vmul.f32 %v171_v13, %v167_v8 }
  0x46   :  { %v91_v17 = vmul.f32 %v173_v15, %v169_v9  ;;  %v175_v34 = vpop.eup %174 }
  0x47   :  { %v92_v19 = vsel %vm88_vm0, %v171_v13, %v90_v16  ;;  %v177_v38 = vpop.eup %176  ;;  %v66_v44 = vmul.f32 0.6931472, %v175_v34 }
  0x48   :  { %v93_v21 = vsel %vm89_vm1, %v173_v15, %v91_v17  ;;  %v94_v22 = vmul.f32 %v92_v19, %v48_v12  ;;  %v98_v23 = vsub.f32 1.0, %v92_v19  ;;  %v75_v46 = vmul.f32 0.6931472, %v177_v38 }
  0x49   :  { %v95_v24 = vmul.f32 %v93_v21, %v49_v14  ;;  %v99_v25 = vsub.f32 1.0, %v93_v21  ;;  %v72_v52 = vsel %vm71_vm2, %v69_v45, %v66_v44 }
  0x4a   :  { %v100_v27 = vmul.f32 %v98_v23, %v96_v18  ;;  %v81_v55 = vsel %vm80_vm3, %v78_v47, %v75_v46  ;;  %v82_v56 = vadd.f32 %v72_v52, %v62_v48 }
  0x4b   :  { %v101_v29 = vmul.f32 %v99_v25, %v97_v20  ;;  %v83_v59 = vadd.f32 %v81_v55, %v63_v51 }
  0x4c   :  { %v102_v30 = vadd.f32 %v100_v27, %v94_v22  ;;  %v112_v2 = vmul.f32 %v108_v57, %v82_v56 }
  0x4d   :  { %v103_v31 = vadd.f32 %v101_v29, %v95_v24  ;;  %v113_v4 = vmul.f32 %v109_v60, %v83_v59 }
  0x4e   :  { %v110_v33 = vsub.f32 1.0, %v102_v30 }
  0x4f   :  { %v111_v37 = vsub.f32 1.0, %v103_v31 }
  0x50   :  { %178 = vrsqrt.f32 %v110_v33  ;;  %vm116_vm4 = vcmp.eq.f32.partialorder %v110_v33, inf  ;;  %v119_v61 = vand.u32 2147483648, %v110_v33  ;;  %vm118_vm5 = vcmp.eq.f32.partialorder %v110_v33, 0.0 }
  0x51   :  { %180 = vrsqrt.f32 %v111_v37  ;;  %vm123_vm6 = vcmp.eq.f32.partialorder %v111_v37, inf  ;;  %v126_v0 = vand.u32 2147483648, %v111_v37  ;;  %vm125_vm7 = vcmp.eq.f32.partialorder %v111_v37, 0.0 }
  0x5a   :  { %v179_v58 = vpop.eup %178 }
  0x5b   :  { %v181_v62 = vpop.eup %180  ;;  %v115_v63 = vmul.f32 %v179_v58, %v110_v33 }
  0x5c   :  { %v122_v1 = vmul.f32 %v181_v62, %v111_v37 }
  0x5d   :  { %v117_v3 = vsel %vm116_vm4, %v110_v33, %v115_v63 }
  0x5e   :  { %v120_v5 = vsel %vm118_vm5, %v119_v61, %v117_v3  ;;  %v124_v6 = vsel %vm123_vm6, %v111_v37, %v122_v1 }
  0x5f   :  { %v127_v7 = vsel %vm125_vm7, %v126_v0, %v124_v6  ;;  %v128_v8 = vmul.f32 %v120_v5, %v110_v33 }
  0x60   :  { %v129_v9 = vmul.f32 %v127_v7, %v111_v37 }
  0x61   :  { %v130_v10 = vmul.f32 %v128_v8, %v112_v2 }
  0x62   :  { %v131_v11 = vmul.f32 %v129_v9, %v113_v4 }
  0x64   :  { %v143_v12 = vadd.f32 %v131_v11, %v130_v10 }
  0x66   :  { %144 = vst [vmem:[#allocation8] sm:$0xff] %v143_v12 }
  0x67   :  { %237 = shalt.err (!%p234_p6)
}
  0x68   :  { %s238_s10 = scalar_lea.hbm %s318_s2, 128 }
  0x69   :  { %p239_p7 = scmp.ne.s32.totalorder %s318_s2, %s238_s10  ;;  %p242_p8 = scmp.lt.u32.totalorder %s238_s10, %s318_s2 }
  0x6b   :  { %p244_p9 = pnand %p242_p8, %p239_p7 }
  0x6d   :  { %247 = shalt.err (!%p244_p9)
}
  0x6e   :  { %154 = dma.vmem_to_hbm [thread:$0]  %s152_s6, 128, %s318_s2, [#allocation5]  }
  0x6f   :  { %252 = dma.done.wait [#allocation5], 128  }
  0x70   :  { %253 = vsyncadd [#allocation5], 4294967168 }
  0x71   :  { %158 = vsyncpa [#allocation4], 1 }
  0x72   :  { %159 = vsyncpa [#allocation7], 1 }
  0x73   :  { %160 = vsyncpa [#allocation5], 1 }

</bundles_post_ra>
